<compile_context>
chip_gen: v5e
topology: v5e:2x2
jax: 0.10.0
libtpu: 0.0.40
codegen_flags: <defaults>
</compile_context>

<pallas_src>
import functools

import jax
import jax.numpy as jnp
from jax.experimental import pallas as pl
from jax.experimental.pallas import tpu as pltpu


def _attn_net_kernel(x_ref, w1_ref, b1_ref, w2_ref, b2_ref, a_ref):
    """One row tile: A_t[:, tile] = (tanh(x @ W1 + b1) @ W2 + b2)^T."""
    w1 = w1_ref[...]                           # (L, D), f32 or bf16 (pre-cast)
    x = x_ref[...]                             # (TN, L)
    if x.dtype != w1.dtype:
        x = x.astype(w1.dtype)                 # feed MXU in the compute dtype
    # Dominant matmul: f32 accumulation on the MXU.
    h = jnp.dot(x, w1, preferred_element_type=jnp.float32)          # (TN, D)
    # Bias + tanh in f32 (v5e has no bf16 VALU/EUP).
    h = jnp.tanh(h + b1_ref[...])                                   # (TN, D)
    # Second stage (<1% of FLOPs): contract D, producing the result already
    # lane-major as (C, TN) so the store is lane-dense (no (TN, 1) vst.msk).
    a_t = jnp.einsum("cd,nd->cn", w2_ref[...], h,
                     preferred_element_type=jnp.float32)            # (C, TN)
    a_t = a_t + b2_ref[...]                                         # (C, 1) bcast
    a_ref[...] = a_t.astype(a_ref.dtype)


def _round_up(v, m):
    return ((v + m - 1) // m) * m


@functools.partial(jax.jit, static_argnames=("block_n", "use_bf16_matmul"))
def attn_net_forward(x, w1, b1, w2, b2, *, block_n=1024, use_bf16_matmul=True):
    """Pallas implementation of Attn_Net.forward.

    x : (N, L) float32 or bfloat16
    w1: (L, D)   b1: (1, D) or (D,)
    w2: (D, C)   b2: (1, C) or (C,)
    returns (A, x) with A of shape (N, C), matching the PyTorch module.
    """
    N, L = x.shape
    D = w1.shape[1]
    C = w2.shape[1]

    # Parameters, cast/reshaped ONCE per call (not per grid step):
    w1_in = w1.astype(jnp.bfloat16) if use_bf16_matmul else w1.astype(jnp.float32)
    b1_in = b1.reshape(1, D).astype(jnp.float32)
    w2_in = jnp.transpose(w2).astype(jnp.float32)      # (C, D)
    b2_in = b2.reshape(C, 1).astype(jnp.float32)       # (C, 1)

    # Row tile: multiple of 128 (lane-dense output block + bf16 packing), and
    # capped at ~ceil(N/2) so the grid has >= 2 steps whenever possible
    # (lets both v7x TensorCores take work even for medium bags).
    half = _round_up(pl.cdiv(max(N, 1), 2), 128)
    tn = max(128, min(_round_up(block_n, 128), half))
    grid = (pl.cdiv(N, tn),)                            # ragged last block; no pad

    # Explicit VMEM budget (v5e scoped default is only 16 MiB):
    #   x double-buffered + weights double-buffered + lane-dense output.
    est = (2 * tn * L * x.dtype.itemsize
           + 2 * (L * D * w1_in.dtype.itemsize + C * D * 4 + D * 4 + C * 4)
           + 2 * max(C, 8) * tn * x.dtype.itemsize)
    vmem_limit = int(min(max(2 * est + (4 << 20), 16 << 20), 64 << 20))

    a_t = pl.pallas_call(
        _attn_net_kernel,
        out_shape=jax.ShapeDtypeStruct((C, N), x.dtype),
        grid=grid,
        in_specs=[
            # x streamed in row tiles (auto double-buffered).
            pl.BlockSpec((tn, L), lambda i: (i, 0)),
            # Weights / biases: constant index_map -> resident across steps.
            pl.BlockSpec((L, D), lambda i: (0, 0)),
            pl.BlockSpec((1, D), lambda i: (0, 0)),
            pl.BlockSpec((C, D), lambda i: (0, 0)),
            pl.BlockSpec((C, 1), lambda i: (0, 0)),
        ],
        # Lane-dense output block: last dim is tn (multiple of 128).
        out_specs=pl.BlockSpec((C, tn), lambda i: (0, i)),
        compiler_params=pltpu.CompilerParams(
            dimension_semantics=("parallel",),
            vmem_limit_bytes=vmem_limit,
        ),
    )(x, w1_in, b1_in, w2_in, b2_in)

    # Transpose the tiny (C, N) slab back to module layout (layout plumbing).
    a = jnp.transpose(a_t)                              # (N, C)
    # Passthrough of x (the module returns the untouched input as well).
    return a, x


def _reference(x, w1, b1, w2, b2):
    h = jnp.tanh(x @ w1 + b1)
    return h @ w2 + b2


if __name__ == "__main__":
    # Small shapes (real CLAM uses L=1024, D=256, C=1).  N is deliberately not
    # a multiple of the tile (ragged last block) and block_n is small enough
    # to give a multi-step grid.
    N, L, D = 300, 128, 128
    BLOCK_N = 128

    key = jax.random.PRNGKey(0)
    kx, kp = jax.random.split(key)
    x = jax.random.normal(kx, (N, L), dtype=jnp.float32)

    # TODO(synk): dropout=True ctor path (nn.Dropout(0.25)) not implemented;
    # it is identity at inference anyway.

    for C in (1, 3):
        kw1, kb1, kw2, kb2 = jax.random.split(jax.random.fold_in(kp, C), 4)
        # Stored as (in, out) so the kernel does x @ W directly.
        w1 = jax.random.normal(kw1, (L, D), dtype=jnp.float32) * (1.0 / jnp.sqrt(L))
        b1 = jax.random.normal(kb1, (1, D), dtype=jnp.float32) * 0.01
        w2 = jax.random.normal(kw2, (D, C), dtype=jnp.float32) * (1.0 / jnp.sqrt(D))
        b2 = jax.random.normal(kb2, (1, C), dtype=jnp.float32) * 0.01

        ref = _reference(x, w1, b1, w2, b2)

        # --- exact f32 MXU feed ---
        a32, x_out = attn_net_forward(x, w1, b1, w2, b2,
                                      block_n=BLOCK_N, use_bf16_matmul=False)
        jax.block_until_ready((a32, x_out))
        assert a32.shape == (N, C) and x_out.shape == (N, L)
        assert jnp.allclose(a32, ref, atol=1e-5, rtol=1e-5)
        assert jnp.array_equal(x_out, x)

        # --- default path: bf16-fed MXU (looser tolerance) ---
        abf, _ = attn_net_forward(x, w1, b1, w2, b2, block_n=BLOCK_N)
        jax.block_until_ready(abf)
        assert jnp.allclose(abf, ref, atol=5e-2, rtol=5e-2)

        # --- x already bf16 from an upstream producer (no in-kernel cast) ---
        abx, _ = attn_net_forward(x.astype(jnp.bfloat16), w1, b1, w2, b2,
                                  block_n=BLOCK_N)
        jax.block_until_ready(abx)
        assert jnp.allclose(abx.astype(jnp.float32), ref, atol=1e-1, rtol=1e-1)

    print("KERNEL_OK")
</pallas_src>

<mosaic_0001>
module attributes {stable_mosaic.version = 11 : i64} {
  func.func @_attn_net_kernel(%arg0: i32, %arg1: memref<128x128xf32, #tpu.memory_space<vmem>>, %arg2: memref<128x128xf32, #tpu.memory_space<vmem>>, %arg3: memref<1x128xf32, #tpu.memory_space<vmem>>, %arg4: memref<1x128xf32, #tpu.memory_space<vmem>>, %arg5: memref<1x1xf32, #tpu.memory_space<vmem>>, %arg6: memref<1x128xf32, #tpu.memory_space<vmem>>) attributes {dimension_semantics = [#tpu.dimension_semantics<parallel>], iteration_bounds = array<i64: 3>, scalar_prefetch = 0 : i64, scratch_operands = 0 : i64, tpu.core_type = #tpu.core_type<tc>, window_params = [{transform_indices = @transform_0, window_bounds = array<i64: 128, 128>}, {pipeline_mode = #tpu.pipeline_mode<synchronous>, transform_indices = @transform_1, window_bounds = array<i64: 128, 128>}, {pipeline_mode = #tpu.pipeline_mode<synchronous>, transform_indices = @transform_2, window_bounds = array<i64: 1, 128>}, {pipeline_mode = #tpu.pipeline_mode<synchronous>, transform_indices = @transform_3, window_bounds = array<i64: 1, 128>}, {pipeline_mode = #tpu.pipeline_mode<synchronous>, transform_indices = @transform_4, window_bounds = array<i64: 1, 1>}, {transform_indices = @transform_5, window_bounds = array<i64: 1, 128>}]} {
    %c0 = arith.constant 0 : index
    %c0_0 = arith.constant 0 : index
    %0 = vector.load %arg2[%c0, %c0_0] : memref<128x128xf32, #tpu.memory_space<vmem>>, vector<128x128xf32>
    %c0_1 = arith.constant 0 : index
    %c0_2 = arith.constant 0 : index
    %1 = vector.load %arg1[%c0_1, %c0_2] : memref<128x128xf32, #tpu.memory_space<vmem>>, vector<128x128xf32>
    %cst = arith.constant dense<0.000000e+00> : vector<128x128xf32>
    %2 = tpu.matmul %1, %0, %cst {dimension_numbers = #tpu.dot_dimension_numbers<[1], [0], [0], [1], [0, 0, 1, 1], [], []>} : vector<128x128xf32>, vector<128x128xf32>, vector<128x128xf32> -> vector<128x128xf32>
    %c0_3 = arith.constant 0 : index
    %c0_4 = arith.constant 0 : index
    %3 = vector.load %arg3[%c0_3, %c0_4] : memref<1x128xf32, #tpu.memory_space<vmem>>, vector<1x128xf32>
    %4 = vector.broadcast %3 : vector<1x128xf32> to vector<128x128xf32>
    %5 = arith.addf %2, %4 : vector<128x128xf32>
    %6 = math.tanh %5 : vector<128x128xf32>
    %c0_5 = arith.constant 0 : index
    %c0_6 = arith.constant 0 : index
    %7 = vector.load %arg4[%c0_5, %c0_6] : memref<1x128xf32, #tpu.memory_space<vmem>>, vector<1x128xf32>
    "tpu.trace_start"() <{level = 10 : i32, message = "cd,nd->cn"}> : () -> ()
    %cst_7 = arith.constant dense<0.000000e+00> : vector<1x128xf32>
    %8 = tpu.matmul %7, %6, %cst_7 {dimension_numbers = #tpu.dot_dimension_numbers<[1], [1], [0], [0], [0, 0, 1, 0], [], []>} : vector<1x128xf32>, vector<128x128xf32>, vector<1x128xf32> -> vector<1x128xf32>
    "tpu.trace_stop"() : () -> ()
    %c0_8 = arith.constant 0 : index
    %c0_9 = arith.constant 0 : index
    %9 = vector.load %arg5[%c0_8, %c0_9] : memref<1x1xf32, #tpu.memory_space<vmem>>, vector<1x1xf32>
    %10 = vector.broadcast %9 : vector<1x1xf32> to vector<1x128xf32>
    %11 = arith.addf %8, %10 : vector<1x128xf32>
    %c0_10 = arith.constant 0 : index
    %c0_11 = arith.constant 0 : index
    %12 = vector.load %arg6[%c0_10, %c0_11] : memref<1x128xf32, #tpu.memory_space<vmem>>, vector<1x128xf32>
    tpu.vector_store %arg6[%c0_10, %c0_11], %11 {strides = array<i32>} : memref<1x128xf32, #tpu.memory_space<vmem>>, vector<1x128xf32>,
    return
  }
  func.func @transform_0(%arg0: i32) -> (i32, i32) {
    %c0_i32 = arith.constant 0 : i32
    %c0_i32_0 = arith.constant 0 : i32
    return %arg0, %c0_i32 : i32, i32
  }
  func.func @transform_1(%arg0: i32) -> (i32, i32) {
    %c0_i32 = arith.constant 0 : i32
    %c0_i32_0 = arith.constant 0 : i32
    %c0_i32_1 = arith.constant 0 : i32
    return %c0_i32, %c0_i32_0 : i32, i32
  }
  func.func @transform_2(%arg0: i32) -> (i32, i32) {
    %c0_i32 = arith.constant 0 : i32
    %c0_i32_0 = arith.constant 0 : i32
    %c0_i32_1 = arith.constant 0 : i32
    return %c0_i32, %c0_i32_0 : i32, i32
  }
  func.func @transform_3(%arg0: i32) -> (i32, i32) {
    %c0_i32 = arith.constant 0 : i32
    %c0_i32_0 = arith.constant 0 : i32
    %c0_i32_1 = arith.constant 0 : i32
    return %c0_i32, %c0_i32_0 : i32, i32
  }
  func.func @transform_4(%arg0: i32) -> (i32, i32) {
    %c0_i32 = arith.constant 0 : i32
    %c0_i32_0 = arith.constant 0 : i32
    %c0_i32_1 = arith.constant 0 : i32
    return %c0_i32, %c0_i32_0 : i32, i32
  }
  func.func @transform_5(%arg0: i32) -> (i32, i32) {
    %c0_i32 = arith.constant 0 : i32
    %c0_i32_0 = arith.constant 0 : i32
    return %c0_i32, %arg0 : i32, i32
  }
}

</mosaic_0001>

<bundles_post_ra>
// kernel: attn_net_forward.1
= control target key start
LH: loop header
LB: loop body
LE: loop exit
PB: predicated region body
PF: predicated region fallthrough
CT: control target
= control target key end

     0   :  { %s1042_s0 = inlined_call_operand.hbm [shape: f32[300,128], index: 0, kind: input, shape index: {}]   ;;  %s1043_s1 = inlined_call_operand.hbm [shape: f32[128,128], index: 1, kind: input, shape index: {}]   ;;  %s1044_s2 = inlined_call_operand.vmem [shape: f32[1,128], index: 2, kind: input, shape index: {}]   ;;  %s1045_s3 = inlined_call_operand.vmem [shape: f32[1,128], index: 3, kind: input, shape index: {}]   ;;  %s1046_s4 = inlined_call_operand.<no memory space> [shape: f32[1,1], index: 4, kind: input, shape index: {}]   ;;  %s1047_s5 = inlined_call_operand.hbm [shape: f32[1,300], index: 5, kind: output, shape index: {}]  }
   0x1   :  { %v10_v0 = vstv %s1046_s4 }
   0x2   :  { %11 = vst [vmem:[#allocation2] sm:$0x1] %v10_v0 }
   0x3   :  { %12 = vsyncpa [#allocation4], 0 }
   0x4   :  { %14 = vsyncpa [#allocation4 + $0x1], 0 }
   0x5   :  { %15 = vsyncpa [#allocation7], 0 }
   0x6   :  { %16 = vsyncpa [#allocation5], 0 }
   0x7   :  { %18 = vsyncpa [#allocation5 + $0x1], 0  ;;  %s830_s20 = smov 0   ;;  %s832_s21 = smov 0  }
   0x8   :  { %s834_s22 = smov 0   ;;  %s836_s23 = smov 0  }
   0x9 LB: > { %s851_s4 = sadd.s32 4294967295, %s788_s23   ;;  %s510_s24 = sadd.s32 4294967294, %s788_s23   ;;  %s788_s23 = sphi %s836_s23, %s1063_s23   ;;  %s784_s22 = sphi %s834_s22, %s1062_s22   ;;  %s780_s21 = sphi %s832_s21, %s1061_s21   ;;  %s776_s20 = sphi %s830_s20, %s1060_s20  }
   0xa   : > { %s855_s25 = sadd.s32 1, %s788_s23   ;;  %s31_s26 = sadd.s32 1, %s784_s22 }
   0xb   : > { %s28_s27 = ssub.s32 %s788_s23, %s855_s25  ;;  %p38_p0 = scmp.ne.s32.totalorder %s784_s22, %s780_s21 }
   0xc   : > { %p29_p1 = scmp.eq.s32.totalorder %s28_s27, 0  ;;  %p39_p2 = scmp.eq.s32.totalorder %s788_s23, 0 }
   0xd   : > { %p44_p3 = scmp.ne.s32.totalorder %s780_s21, %s776_s20  ;;  %p1049_p4 = scmp.eq.s32.totalorder %s851_s4, 0 }
   0xe   : > { %s867_s28 = scalar_select %p29_p1, %s784_s22, %s31_s26  }
   0xf   : > { %p869_p5 = por %p39_p2, %p38_p0  ;;  %p875_p6 = por %p1049_p4, %p44_p3 }
  0x10   : > { %p152_p7 = scmp.eq.s32.totalorder %s851_s4, 2  ;;  %p158_p8 = scmp.eq.s32.totalorder %s510_s24, 2 }
  0x11   : > { %p511_p9 = scmp.ge.s32.totalorder %s788_s23, 1  ;;  %p165_p10 = scmp.lt.s32.totalorder %s788_s23, 4 }
  0x12   : > { %p882_p11 = por %p152_p7, %p38_p0  ;;  %p886_p12 = por %p158_p8, %p44_p3 }
  0x13   : > { %p890_p13 = pnand %p511_p9, %p165_p10  ;;  %s176_s11 = sshll.u32 %s1043_s1, 4  ;;  %s177_s11 = int_to_ptr.hbm [resolvable:$true] %s176_s11 }
  0x14   : > { %s1053_s7 = scalar_select %p886_p12, 1, 0 }
  0x15   : > { %p566_p1 = pneg %p890_p13  ;;  %s790_s12 = smov [#allocation6]  }
  0x16   : > { %s178_s13 = sshll.u32 %s790_s12, 4  ;;  %s791_s14 = smov 128   ;;  %s179_s13 = int_to_ptr.vmem [resolvable:$true] %s178_s13 }
  0x17   : > { %p567_p0 = pnand %p566_p1, %p1049_p4  ;;  %s792_s15 = smov 8  }
  0x18   : > { %p513_p2 = scmp.ge.s32.totalorder %s788_s23, 3 }
  0x19   : > { %569 = dma.hbm_to_vmem [thread:$0]  (!%p567_p0), %s177_s11, 2048, %s179_s13, [#allocation7], %s791_s14, %s791_s14, %s792_s15  }
  0x1a   : > { %197 = sbr.rel (%p513_p2) target bundleno = 68 (0x44), region = 32 }
  0x1f   : > { %200 = sbr.rel (!%p869_p5) target bundleno = 68 (0x44), region = 36  ;;  %s201_s16 = sand.u32 (%p869_p5), 1, %s784_s22  }
  0x20   : > { %s515_s17 = sshll.u32 (%p869_p5), %s788_s23, 4  ;;  %s514_s18 = sshll.u32 (%p869_p5), %s201_s16, 7 }
  0x21   : > { %s207_s19 = ssub.s32 (%p869_p5), 38, %s515_s17  ;;  %s909_s9 = scalar_lea.sflag (%p869_p5), [#allocation4], %s201_s16 }
  0x22   : > { %p208_p3 = scmp.lt.s32.totalorder (%p869_p5), %s207_s19, 16  ;;  %s205_s10 = scalar_lea.vmem (%p869_p5), [#allocation3], %s514_s18 }
  0x24   : > { %s1065_s19 = smov (!%p208_p3, %s207_s19), 16 }
  0x25   : > { %s516_s24 = sshll.u32 %s1065_s19, 3 }
  0x26   : > { %s211_s26 = ssub.s32 128, %s516_s24 }
  0x27   : > { %s212_s27 = sshll.u32 %s211_s26, 4 }
  0x28   : > { %213 = vsyncadd %s909_s9, %s212_s27  ;;  %p912_p5 = scmp.ne.s32.totalorder %s516_s24, 0  ;;  %s526_s11 = sshll.u32 %s788_s23, 7 }
  0x29   : > { %s216_s14 = scalar_lea.hbm %s1042_s0, %s526_s11  ;;  %s920_s15 = sshll.u32 %s205_s10, 4  ;;  %s221_s15 = int_to_ptr.vmem [resolvable:$true] %s920_s15 }
  0x2a   : > { %s218_s16 = sshll.u32 %s216_s14, 4  ;;  %s1048_s17 = sshll.u32 %s1065_s19, 7  ;;  %s923_s16 = int_to_ptr.hbm [resolvable:$true] %s218_s16 }
  0x2b   : > { %s679_s18 = sshra.s32 %s923_s16, 4  ;;  %s681_s24 = sshrl.u32 %s1048_s17, 4  ;;  %s680_s18 = int_to_ptr.hbm [resolvable:$true] %s679_s18 }
  0x2c   : > { %s686_s26 = scalar_lea.hbm %s680_s18, %s681_s24  ;;  %s690_s10 = scalar_lea.hbm %s1042_s0, 304 }
  0x2d   : > { %p687_p7 = scmp.ne.s32.totalorder %s680_s18, %s686_s26  ;;  %p691_p10 = scmp.lt.s32.totalorder %s680_s18, %s1042_s0 }
  0x2e   : > { %p692_p1 = scmp.lt.s32.totalorder %s690_s10, %s686_s26 }
  0x2f   : > { %p688_p8 = pnand %p687_p7, %p912_p5 }
  0x30   : > { %p693_p0 = por %p692_p1, %p691_p10 }
  0x31   : > { %p689_p9 = pneg %p688_p8 }
  0x33   : > { %p694_p2 = pnand %p693_p0, %p689_p9 }
  0x35   : > { %697 = shalt.err (!%p694_p2)
}
  0x36   : > { %s698_s14 = sshra.s32 %s221_s15, 4  ;;  %s793_s27 = smov [#allocation3]   ;;  %s699_s14 = int_to_ptr.vmem [resolvable:$true] %s698_s14 }
  0x37   : > { %s705_s17 = scalar_lea.vmem %s699_s14, %s681_s24  ;;  %s709_s11 = scalar_lea.vmem %s793_s27, 256 }
  0x38   : > { %p706_p3 = scmp.ne.s32.totalorder %s699_s14, %s705_s17  ;;  %p711_p4 = scmp.lt.s32.totalorder %s709_s11, %s705_s17 }
  0x3a   : > { %p707_p7 = pnand %p706_p3, %p912_p5 }
  0x3c   : > { %p708_p8 = pneg %p707_p7 }
  0x3e   : > { %p713_p12 = pnand %p711_p4, %p708_p8 }
  0x40   : > { %716 = shalt.err (!%p713_p12)
}
  0x41   : > { %s794_s18 = smov 128   ;;  %s795_s26 = smov 8  }
  0x42   : > { %s1056_s10 = sshll.u32 %s1065_s19, 7 }
  0x43   : > { %226 = dma.hbm_to_vmem [thread:$0]  (%p912_p5), %s923_s16, %s1056_s10, %s221_s15, %s909_s9, %s794_s18, %s794_s18, %s795_s26  }
  0x44 PF: > { %232 = sbr.rel (%p890_p13) target bundleno = 476 (0x1dc), region = 40  ;;  %s952_s17 = sand.u32 (!%p890_p13), 1, %s780_s21  }
  0x45   : > { %s522_s24 = sshll.u32 (!%p890_p13), %s952_s17, 7  ;;  %s235_s12 = scalar_lea.sflag (!%p890_p13), [#allocation4], %s952_s17 }
  0x46   : > { %s956_s13 = scalar_lea.vmem (!%p890_p13), [#allocation3], %s522_s24 }
  0x49   : > { %763 = dma.done.wait (%p875_p6), %s235_s12, 2048  }
  0x4a   : > { %765 = vsyncadd (%p875_p6), %s235_s12, 4294965248  ;;  %p1057_p4 = scmp.eq.s32.totalorder %s851_s4, 0 }
  0x4c   : > { %767 = dma.done.wait (%p1057_p4), [#allocation7], 2048   ;;  %p1058_p12 = pmov %p1057_p4 }
  0x4d   : > { %v290_v1 = vld [vmem:[#allocation6 + $0x78] sm:$0xff]  ;;  %v289_v2 = vld [vmem:[#allocation6 + $0x70] sm:$0xff]  ;;  %v288_v3 = vld [vmem:[#allocation6 + $0x68] sm:$0xff]  ;;  %s430_s16 = scalar_lea.hbm %s1047_s5, %s851_s4  ;;  %s269_s14 = scalar_lea.vmem [#allocation8], %s952_s17 }
  0x4e   : > { %769 = vsyncadd (%p1058_p12), [#allocation7], 4294965248  ;;  %528 = vmatpush.msra.mxu3 %v290_v1  ;;  %527 = vmatpush.msra.mxu2 %v290_v1  ;;  %v287_v4 = vld [vmem:[#allocation6 + $0x60] sm:$0xff]  ;;  %v286_v5 = vld [vmem:[#allocation6 + $0x58] sm:$0xff]  ;;  %s432_s27 = sshll.u32 %s269_s14, 4  ;;  %s434_s11 = sshll.u32 %s430_s16, 4  ;;  %s433_s27 = int_to_ptr.vmem [resolvable:$true] %s432_s27  ;;  %s435_s11 = int_to_ptr.hbm [resolvable:$true] %s434_s11 }
  0x4f   : > { %311 = vmatpush.msra.mxu0 %v290_v1  ;;  %v285_v6 = vld [vmem:[#allocation6 + $0x50] sm:$0xff]  ;;  %v284_v7 = vld [vmem:[#allocation6 + $0x48] sm:$0xff]  ;;  %v283_v8 = vld [vmem:[#allocation6 + $0x40] sm:$0xff]  ;;  %s422_s18 = scalar_lea.sflag [#allocation5], %s952_s17  ;;  %s732_s26 = sshra.s32 %s435_s11, 4  ;;  %s733_s26 = int_to_ptr.hbm [resolvable:$true] %s732_s26 }
  0x50   : > { %530 = vmatpush.msra.mxu3 %v289_v2  ;;  %529 = vmatpush.msra.mxu2 %v289_v2  ;;  %v282_v9 = vld [vmem:[#allocation6 + $0x38] sm:$0xff]  ;;  %v281_v10 = vld [vmem:[#allocation6 + $0x30] sm:$0xff]  ;;  %v280_v11 = vld [vmem:[#allocation6 + $0x28] sm:$0xff]  ;;  %s734_s10 = scalar_lea.hbm %s733_s26, 1  ;;  %s738_s4 = scalar_lea.hbm %s1047_s5, 3 }
  0x51   : > { %312 = vmatpush.msra.mxu0 %v289_v2  ;;  %v279_v12 = vld [vmem:[#allocation6 + $0x20] sm:$0xff]  ;;  %v278_v13 = vld [vmem:[#allocation6 + $0x18] sm:$0xff]  ;;  %v277_v14 = vld [vmem:[#allocation6 + $0x10] sm:$0xff]  ;;  %p735_p6 = scmp.ne.s32.totalorder %s733_s26, %s734_s10  ;;  %p739_p9 = scmp.lt.s32.totalorder %s733_s26, %s1047_s5 }
  0x52   : > { %532 = vmatpush.msra.mxu3 %v288_v3  ;;  %531 = vmatpush.msra.mxu2 %v288_v3  ;;  %v276_v15 = vld [vmem:[#allocation6 + $0x8] sm:$0xff]  ;;  %v275_v16 = vld [vmem:[#allocation6] sm:$0xff]  ;;  %v302_v17 = vld [vmem:[%s956_s13 + $0x58] sm:$0xff]  ;;  %p740_p10 = scmp.lt.s32.totalorder %s738_s4, %s734_s10 }
  0x53   : > { %313 = vmatpush.msra.mxu0 %v288_v3  ;;  %v296_v18 = vld [vmem:[%s956_s13 + $0x28] sm:$0xff]  ;;  %v291_v19 = vld [vmem:[%s956_s13] sm:$0xff]  ;;  %v297_v21 = vld [vmem:[%s956_s13 + $0x30] sm:$0xff]  ;;  %p736_p13 = pnand %p735_p6, %p882_p11 }
  0x54   : > { %534 = vmatpush.msra.mxu3 %v287_v4  ;;  %533 = vmatpush.msra.mxu2 %v287_v4  ;;  %v303_v20 = vld [vmem:[%s956_s13 + $0x60] sm:$0xff]  ;;  %v292_v22 = vld [vmem:[%s956_s13 + $0x8] sm:$0xff]  ;;  %v298_v24 = vld [vmem:[%s956_s13 + $0x38] sm:$0xff]  ;;  %p741_p1 = por %p740_p10, %p739_p9 }
  0x55   : > { %314 = vmatpush.msra.mxu0 %v287_v4  ;;  %v304_v23 = vld [vmem:[%s956_s13 + $0x68] sm:$0xff]  ;;  %v293_v25 = vld [vmem:[%s956_s13 + $0x10] sm:$0xff]  ;;  %v299_v27 = vld [vmem:[%s956_s13 + $0x40] sm:$0xff]  ;;  %p737_p5 = pneg %p736_p13 }
  0x56   : > { %536 = vmatpush.msra.mxu3 %v286_v5  ;;  %535 = vmatpush.msra.mxu2 %v286_v5  ;;  %v305_v26 = vld [vmem:[%s956_s13 + $0x70] sm:$0xff]  ;;  %v294_v28 = vld [vmem:[%s956_s13 + $0x18] sm:$0xff]  ;;  %v300_v30 = vld [vmem:[%s956_s13 + $0x48] sm:$0xff] }
  0x57   : > { %315 = vmatpush.msra.mxu0 %v286_v5  ;;  %v306_v29 = vld [vmem:[%s956_s13 + $0x78] sm:$0xff]  ;;  %v295_v31 = vld [vmem:[%s956_s13 + $0x20] sm:$0xff]  ;;  %v301_v32 = vld [vmem:[%s956_s13 + $0x50] sm:$0xff]  ;;  %p742_p0 = pnand %p741_p1, %p737_p5 }
  0x58   : > { %538 = vmatpush.msra.mxu3 %v285_v6  ;;  %537 = vmatpush.msra.mxu2 %v285_v6  ;;  %v987_v42 = vld [vmem:[%s1044_s2] ss:$0 sm:$0xff] }
  0x59   : > { %316 = vmatpush.msra.mxu0 %v285_v6 }
  0x5a   : > { %540 = vmatpush.msra.mxu3 %v284_v7  ;;  %539 = vmatpush.msra.mxu2 %v284_v7 }
  0x5b   : > { %317 = vmatpush.msra.mxu0 %v284_v7  ;;  %v393_v7 = vld [vmem:[#allocation2] sm:$0x1] }
  0x5c   : > { %542 = vmatpush.msra.mxu3 %v283_v8  ;;  %541 = vmatpush.msra.mxu2 %v283_v8 }
  0x5d   : > { %318 = vmatpush.msra.mxu0 %v283_v8  ;;  %v796_v8 = vmov 0  }
  0x5e   : > { %544 = vmatpush.msra.mxu3 %v282_v9  ;;  %543 = vmatpush.msra.mxu2 %v282_v9 }
  0x5f   : > { %319 = vmatpush.msra.mxu0 %v282_v9  ;;  %615 = vset.pattern.permute.xlu0 %v796_v8 }
  0x60   : > { %546 = vmatpush.msra.mxu3 %v281_v10  ;;  %545 = vmatpush.msra.mxu2 %v281_v10 }
  0x61   : > { %320 = vmatpush.msra.mxu0 %v281_v10  ;;  %396 = vperm.xlu0 %615, %v393_v7  }
  0x62   : > { %548 = vmatpush.msra.mxu3 %v280_v11  ;;  %547 = vmatpush.msra.mxu2 %v280_v11 }
  0x63   : > { %321 = vmatpush.msra.mxu0 %v280_v11 }
  0x64   : > { %550 = vmatpush.msra.mxu3 %v279_v12  ;;  %549 = vmatpush.msra.mxu2 %v279_v12 }
  0x65   : > { %322 = vmatpush.msra.mxu0 %v279_v12 }
  0x66   : > { %552 = vmatpush.msra.mxu3 %v278_v13  ;;  %551 = vmatpush.msra.mxu2 %v278_v13 }
  0x67   : > { %323 = vmatpush.msra.mxu0 %v278_v13 }
  0x68   : > { %554 = vmatpush.msra.mxu3 %v277_v14  ;;  %553 = vmatpush.msra.mxu2 %v277_v14 }
  0x69   : > { %324 = vmatpush.msra.mxu0 %v277_v14 }
  0x6a   : > { %556 = vmatpush.msra.mxu3 %v276_v15  ;;  %555 = vmatpush.msra.mxu2 %v276_v15 }
  0x6b   : > { %325 = vmatpush.msra.mxu0 %v276_v15 }
  0x6c   : > { %558 = vmatpush.msra.mxu3 %v275_v16  ;;  %557 = vmatpush.msra.mxu2 %v275_v16 }
  0x6d   : > { %360 = vmatmul.f32.vlgmr.msra.gmra.mxu3 %v302_v17  ;;  %342 = vmatmul.f32.vlgmr.msra.gmra.mxu2 %v296_v18 }
  0x6e   : > { %326 = vmatpush.msra.mxu0 %v275_v16 }
  0x6f   : > { %327 = vmatmul.f32.vlgmr.msra.gmra.mxu0 %v291_v19 }
  0x75   : > { %363 = vmatmul.f32.gmra.mxu3 %v303_v20  ;;  %345 = vmatmul.f32.gmra.mxu2 %v297_v21  ;;  %v392_v20 = vld [vmem:[%s1045_s3] sm:$0x1] }
  0x77   : > { %330 = vmatmul.f32.gmra.mxu0 %v292_v22 }
  0x7d   : > { %366 = vmatmul.f32.gmra.mxu3 %v304_v23  ;;  %348 = vmatmul.f32.gmra.mxu2 %v298_v24 }
  0x7f   : > { %333 = vmatmul.f32.gmra.mxu0 %v293_v25 }
  0x85   : > { %369 = vmatmul.f32.gmra.mxu3 %v305_v26  ;;  %351 = vmatmul.f32.gmra.mxu2 %v299_v27 }
  0x87   : > { %336 = vmatmul.f32.gmra.mxu0 %v294_v28 }
  0x8d   : > { %372 = vmatmul.f32.gmra.mxu3 %v306_v29  ;;  %354 = vmatmul.f32.gmra.mxu2 %v300_v30 }
  0x8f   : > { %339 = vmatmul.f32.gmra.mxu0 %v295_v31 }
  0x95   : > { %357 = vmatmul.f32.gmra.mxu2 %v301_v32 }
  0xd3   : > { %v397_v21 = vpop.permute.xlu0 %396 }
  0xd4   : > { %v399_v22 = vperm.slane %v397_v21, 0 }
  0xec   : > { %v982_v41 = vpop.f32.mrf.mxu0 }
  0xed   : > { %v329_v16 = vadd.f32 %v987_v42, %v982_v41 }
  0xf0   : > { %v361_v33 = vpop.f32.mrf.mxu3  ;;  %v343_v34 = vpop.f32.mrf.mxu2 }
  0xf1   : > { %v362_v53 = vadd.f32 %v987_v42, %v361_v33  ;;  %v344_v4 = vadd.f32 %v987_v42, %v343_v34 }
  0xf4   : > { %v331_v48 = vpop.f32.mrf.mxu0 }
  0xf5   : > { %v332_v14 = vadd.f32 %v987_v42, %v331_v48 }
  0xf8   : > { %v364_v35 = vpop.f32.mrf.mxu3  ;;  %v346_v36 = vpop.f32.mrf.mxu2 }
  0xf9   : > { %v365_v50 = vadd.f32 %v987_v42, %v364_v35  ;;  %v347_v1 = vadd.f32 %v987_v42, %v346_v36 }
  0xfc   : > { %v334_v56 = vpop.f32.mrf.mxu0 }
  0xfd   : > { %v335_v13 = vadd.f32 %v987_v42, %v334_v56 }
 0x100   : > { %v367_v37 = vpop.f32.mrf.mxu3  ;;  %v349_v38 = vpop.f32.mrf.mxu2 }
 0x101   : > { %v368_v47 = vadd.f32 %v987_v42, %v367_v37  ;;  %v350_v63 = vadd.f32 %v987_v42, %v349_v38 }
 0x104   : > { %v337_v62 = vpop.f32.mrf.mxu0 }
 0x105   : > { %v338_v10 = vadd.f32 %v987_v42, %v337_v62 }
 0x108   : > { %v370_v39 = vpop.f32.mrf.mxu3  ;;  %v352_v40 = vpop.f32.mrf.mxu2 }
 0x109   : > { %v371_v45 = vadd.f32 %v987_v42, %v370_v39  ;;  %v353_v61 = vadd.f32 %v987_v42, %v352_v40 }
 0x10c   : > { %v340_v3 = vpop.f32.mrf.mxu0 }
 0x10d   : > { %v341_v6 = vadd.f32 %v987_v42, %v340_v3 }
 0x110   : > { %v373_v43 = vpop.f32.mrf.mxu3  ;;  %v355_v46 = vpop.f32.mrf.mxu2 }
 0x111   : > { %v374_v44 = vadd.f32 %v987_v42, %v373_v43  ;;  %v356_v58 = vadd.f32 %v987_v42, %v355_v46 }
 0x113   : > { %617 = vtanh.f32 %v374_v44 }
 0x114   : > { %619 = vtanh.f32 %v371_v45 }
 0x115   : > { %621 = vtanh.f32 %v368_v47 }
 0x116   : > { %623 = vtanh.f32 %v365_v50 }
 0x117   : > { %625 = vtanh.f32 %v362_v53 }
 0x118   : > { %v358_v52 = vpop.f32.mrf.mxu2 }
 0x119   : > { %v618_v49 = vpop.eup %617  ;;  %v359_v55 = vadd.f32 %v987_v42, %v358_v52 }
 0x11a   : > { %400 = vmatpush.xpose.msra.mxu1 %v618_v49  ;;  %v620_v51 = vpop.eup %619 }
 0x11b   : > { %v622_v54 = vpop.eup %621  ;;  %627 = vtanh.f32 %v359_v55 }
 0x11c   : > { %v624_v57 = vpop.eup %623  ;;  %629 = vtanh.f32 %v356_v58 }
 0x11d   : > { %v626_v59 = vpop.eup %625  ;;  %631 = vtanh.f32 %v353_v61 }
 0x11e   : > { %401 = vmatpush.xpose.msra.mxu1 %v620_v51  ;;  %633 = vtanh.f32 %v350_v63 }
 0x11f   : > { %635 = vtanh.f32 %v347_v1 }
 0x120   : > { %637 = vtanh.f32 %v344_v4 }
 0x121   : > { %v628_v60 = vpop.eup %627  ;;  %639 = vtanh.f32 %v341_v6 }
 0x122   : > { %402 = vmatpush.xpose.msra.mxu1 %v622_v54  ;;  %v630_v0 = vpop.eup %629  ;;  %641 = vtanh.f32 %v338_v10 }
 0x123   : > { %v632_v2 = vpop.eup %631  ;;  %643 = vtanh.f32 %v335_v13 }
 0x124   : > { %v634_v5 = vpop.eup %633  ;;  %645 = vtanh.f32 %v332_v14 }
 0x125   : > { %v636_v9 = vpop.eup %635  ;;  %647 = vtanh.f32 %v329_v16 }
 0x126   : > { %403 = vmatpush.xpose.msra.mxu1 %v624_v57  ;;  %v638_v11 = vpop.eup %637 }
 0x127   : > { %v640_v12 = vpop.eup %639 }
 0x128   : > { %v642_v15 = vpop.eup %641 }
 0x129   : > { %v644_v17 = vpop.eup %643 }
 0x12a   : > { %404 = vmatpush.xpose.msra.mxu1 %v626_v59  ;;  %v646_v18 = vpop.eup %645 }
 0x12b   : > { %v648_v19 = vpop.eup %647 }
 0x12e   : > { %405 = vmatpush.xpose.msra.mxu1 %v628_v60 }
 0x132   : > { %406 = vmatpush.xpose.msra.mxu1 %v630_v0 }
 0x136   : > { %407 = vmatpush.xpose.msra.mxu1 %v632_v2 }
 0x13a   : > { %408 = vmatpush.xpose.msra.mxu1 %v634_v5 }
 0x13e   : > { %409 = vmatpush.xpose.msra.mxu1 %v636_v9 }
 0x142   : > { %410 = vmatpush.xpose.msra.mxu1 %v638_v11 }
 0x146   : > { %411 = vmatpush.xpose.msra.mxu1 %v640_v12 }
 0x14a   : > { %412 = vmatpush.xpose.msra.mxu1 %v642_v15 }
 0x14e   : > { %413 = vmatpush.xpose.msra.mxu1 %v644_v17 }
 0x152   : > { %414 = vmatpush.xpose.msra.mxu1 %v646_v18 }
 0x156   : > { %415 = vmatpush.xpose.msra.mxu1 %v648_v19 }
 0x159   : > { %416 = vmatmul.f32.vlgmr.msra.gmra.mxu1 %v392_v20 }
 0x1d6   : > { %v417_v23 = vpop.f32.mrf.mxu1 }
 0x1d7   : > { %v418_v24 = vadd.f32 %v417_v23, %v399_v22 }
 0x1d9   : > { %420 = vst [vmem:[%s269_s14] sm:$0x1] %v418_v24 }
 0x1da   : > { %745 = shalt.err (!%p742_p0)
}
 0x1db   : > { %564 = dma.vmem_to_hbm [thread:$0]  (%p882_p11), %s433_s27, 16, %s435_s11, %s422_s18  }
 0x1dc PF: > { %p576_p2 = scmp.ge.s32.totalorder %s788_s23, 2  ;;  %s446_s17 = sand.u32 1, %s776_s20  }
 0x1dd   : > { %p1059_p3 = scmp.ne.s32.totalorder %s1053_s7, 0  ;;  %s447_s8 = scalar_lea.sflag [#allocation5], %s446_s17 }
 0x1df   : > { %p571_p7 = pnand %p576_p2, %p1059_p3 }
 0x1e1   : > { %p572_p8 = pneg %p571_p7 }
 0x1e3   : > { %771 = dma.done.wait (%p572_p8), %s447_s8, 16  }
 0x1e4   : > { %773 = vsyncadd (%p572_p8), %s447_s8, 4294967280  ;;  %p21_p4 = scmp.ge.s32.totalorder %s855_s25, 5   ;;  %s1060_s20 = smov %s780_s21 }
 0x1e5   : > { %s1061_s21 = smov %s784_s22  ;;  %s1062_s22 = smov %s867_s28 }
 0x1e6   : > { %s1063_s23 = smov %s855_s25  ;;  %23 = sbr.rel (!%p21_p4) target bundleno = 9 (0x9), region = 89 }
 0x1eb   :  { %452 = vsyncpa [#allocation4], 1 }
 0x1ec   :  { %454 = vsyncpa [#allocation4 + $0x1], 1 }
 0x1ed   :  { %455 = vsyncpa [#allocation7], 1 }
 0x1ee   :  { %456 = vsyncpa [#allocation5], 1 }
 0x1ef   :  { %458 = vsyncpa [#allocation5 + $0x1], 1 }

</bundles_post_ra>
